<compile_context>
chip_gen: v7x
topology: tpu7x:2x2x1
jax: 0.10.0
libtpu: 0.0.40
codegen_flags: <defaults>
</compile_context>

<pallas_src>
import functools

import jax
import jax.numpy as jnp
from jax.experimental import pallas as pl
from jax.experimental.pallas import tpu as pltpu


def _round_up(x, m):
    return ((x + m - 1) // m) * m


def _sim_matcher_kernel(logits_ref, event_ref, onehot_ref, te_n_ref,
                        cost_class_ref, cost_sim_ref, *, alpha, gamma):
    # ---- focal classification cost (gather-first) -------------------------
    # One-hot column selection commutes with per-element functions, so gather
    # the T target logits first and run the focal transform on [TILE_N, T_pad].
    g = jax.lax.dot_general(
        logits_ref[...], onehot_ref[...],
        dimension_numbers=(((1,), (1,)), ((), ())),       # logits @ onehot.T
        preferred_element_type=jnp.float32)                # [TILE_N, T_pad]

    prob = jax.nn.sigmoid(g)
    one_m = 1.0 - prob
    if gamma == 2.0:                                       # avoid EUP pow
        p_g = prob * prob
        om_g = one_m * one_m
    else:
        p_g = prob ** gamma
        om_g = one_m ** gamma
    neg = (1.0 - alpha) * p_g * (-jnp.log(one_m + 1e-8))
    pos = alpha * om_g * (-jnp.log(prob + 1e-8))
    cost_class_ref[...] = pos - neg                        # [TILE_N, T_pad]

    # ---- cosine-similarity cost -------------------------------------------
    # F.normalize: x / max(||x||, 1e-12)  ==  x * rsqrt(max(sumsq, 1e-24))
    ee = event_ref[...].astype(jnp.float32)                # [TILE_N, D]
    sumsq = jnp.sum(ee * ee, axis=-1, keepdims=True)
    inv = jax.lax.rsqrt(jnp.maximum(sumsq, 1e-24))
    ee_n = (ee * inv).astype(te_n_ref.dtype)

    sim = jax.lax.dot_general(
        ee_n, te_n_ref[...],
        dimension_numbers=(((1,), (1,)), ((), ())),        # ee_n @ te_n.T
        preferred_element_type=jnp.float32)                # [TILE_N, T_pad]
    cost_sim_ref[...] = 1.0 - sim


def sim_matcher_costs(pred_logits, pred_boxes, tgt_ids, text_embed, event_embed,
                      *, cost_class=1.0, cost_sim=1.0,
                      cost_alpha=0.25, cost_gamma=2.0,
                      tile_n=512, compute_dtype=jnp.bfloat16):
    """Returns (C, costs_dict). C has shape [bs, num_queries, num_targets]."""
    bs, nq, nc = pred_logits.shape
    n = bs * nq
    t = int(tgt_ids.shape[0])
    d = int(text_embed.shape[1])

    # Lane-dense output width; tile over N (multiple of 8, <= tile_n).
    t_pad = _round_up(t, 128)
    tile_n = min(int(tile_n), _round_up(n, 8))
    n_pad = _round_up(n, tile_n)

    logits2d = pred_logits.reshape(n, nc)
    out_bbox = pred_boxes.reshape(n, -1)

    # ---- grid-invariant precompute in the wrapper (done once, not per tile)
    onehot = jax.nn.one_hot(tgt_ids.astype(jnp.int32), nc, dtype=jnp.float32)
    te = text_embed.astype(jnp.float32)
    te_n = te * jax.lax.rsqrt(
        jnp.maximum(jnp.sum(te * te, axis=-1, keepdims=True), 1e-24))

    def pad2d(x, rows, cols):
        r, c = x.shape
        return jnp.pad(x, ((0, rows - r), (0, cols - c)))

    logits_p = pad2d(logits2d.astype(compute_dtype), n_pad, nc)
    event_p = pad2d(event_embed.astype(compute_dtype), n_pad, d)
    onehot_p = pad2d(onehot.astype(compute_dtype), t_pad, nc)
    te_n_p = pad2d(te_n.astype(compute_dtype), t_pad, d)

    kernel = functools.partial(_sim_matcher_kernel,
                               alpha=float(cost_alpha), gamma=float(cost_gamma))

    grid = (n_pad // tile_n,)
    out_shape = (jax.ShapeDtypeStruct((n_pad, t_pad), jnp.float32),
                 jax.ShapeDtypeStruct((n_pad, t_pad), jnp.float32))

    cc_p, cs_p = pl.pallas_call(
        kernel,
        grid_spec=pltpu.PrefetchScalarGridSpec(
            num_scalar_prefetch=0,
            grid=grid,
            in_specs=[
                pl.BlockSpec((tile_n, nc), lambda i: (i, 0)),   # logits tile
                pl.BlockSpec((tile_n, d), lambda i: (i, 0)),    # event tile
                pl.BlockSpec((t_pad, nc), lambda i: (0, 0)),    # one-hot (resident)
                pl.BlockSpec((t_pad, d), lambda i: (0, 0)),     # te_n (resident)
            ],
            out_specs=[
                pl.BlockSpec((tile_n, t_pad), lambda i: (i, 0)),
                pl.BlockSpec((tile_n, t_pad), lambda i: (i, 0)),
            ],
        ),
        out_shape=out_shape,
        compiler_params=pltpu.CompilerParams(
            dimension_semantics=("parallel",)),
    )(logits_p, event_p, onehot_p, te_n_p)

    cc = cc_p[:n, :t]
    cs = cs_p[:n, :t]
    C = cost_class * cc + cost_sim * cs     # trivial XLA fusion (not in-kernel)

    zeros = jnp.zeros_like(cc)              # use_pseudo_box=False branch
    costs = {
        'cost_bbox': zeros,
        'cost_class': cc,
        'cost_giou': zeros,
        'cost_sim': cs,
        'out_bbox': out_bbox[:, 0::2],
    }
    # TODO(synk): linear_sum_assignment (Hungarian matching) on C is a
    # sequential CPU algorithm with no Pallas equivalent; not implemented here.
    return C.reshape(bs, nq, t), costs


def _reference_costs(pred_logits, tgt_ids, text_embed, event_embed,
                     cost_class=1.0, cost_sim=1.0, alpha=0.25, gamma=2.0):
    bs, nq, nc = pred_logits.shape
    prob = jax.nn.sigmoid(pred_logits.reshape(bs * nq, nc).astype(jnp.float32))
    neg = (1 - alpha) * prob ** gamma * (-jnp.log(1 - prob + 1e-8))
    pos = alpha * (1 - prob) ** gamma * (-jnp.log(prob + 1e-8))
    cc = pos[:, tgt_ids] - neg[:, tgt_ids]
    te = text_embed / jnp.maximum(
        jnp.linalg.norm(text_embed, axis=1, keepdims=True), 1e-12)
    ee = event_embed / jnp.maximum(
        jnp.linalg.norm(event_embed, axis=1, keepdims=True), 1e-12)
    cs = 1.0 - ee @ te.T
    return cost_class * cc + cost_sim * cs


if __name__ == "__main__":
    key = jax.random.PRNGKey(0)
    k1, k2, k3, k4, k5 = jax.random.split(key, 5)

    bs, num_queries, num_classes = 2, 8, 32
    num_targets, hidden = 6, 32

    pred_logits = jax.random.normal(k1, (bs, num_queries, num_classes), jnp.float32)
    pred_boxes = jax.random.uniform(k2, (bs, num_queries, 4), jnp.float32)
    tgt_ids = jax.random.randint(k3, (num_targets,), 0, num_classes, jnp.int32)
    text_embed = jax.random.normal(k4, (num_targets, hidden), jnp.float32)
    event_embed = jax.random.normal(k5, (bs * num_queries, hidden), jnp.float32)

    C_ref = _reference_costs(pred_logits, tgt_ids, text_embed, event_embed)

    # Tight numeric check with the f32 compute path (exact gather + f32 matmuls).
    C32, _ = sim_matcher_costs(pred_logits, pred_boxes, tgt_ids,
                               text_embed, event_embed,
                               compute_dtype=jnp.float32)
    jax.block_until_ready(C32)
    assert jnp.allclose(C32.reshape(bs * num_queries, num_targets), C_ref,
                        atol=1e-4, rtol=1e-4), "f32 path mismatch vs reference"

    # Default performance path: bf16 MXU inputs with f32 accumulation.
    C, costs = sim_matcher_costs(pred_logits, pred_boxes, tgt_ids,
                                 text_embed, event_embed)
    jax.block_until_ready(C)
    assert jnp.allclose(C.reshape(bs * num_queries, num_targets), C_ref,
                        atol=5e-2, rtol=5e-2), "bf16 path mismatch vs reference"

    print("KERNEL_OK")
</pallas_src>

<mosaic_0001>
module attributes {stable_mosaic.version = 11 : i64} {
  func.func @_sim_matcher_kernel(%arg0: i32, %arg1: memref<16x32xf32, #tpu.memory_space<vmem>>, %arg2: memref<16x32xf32, #tpu.memory_space<vmem>>, %arg3: memref<128x32xf32, #tpu.memory_space<vmem>>, %arg4: memref<128x32xf32, #tpu.memory_space<vmem>>, %arg5: memref<16x128xf32, #tpu.memory_space<vmem>>, %arg6: memref<16x128xf32, #tpu.memory_space<vmem>>) attributes {dimension_semantics = [#tpu.dimension_semantics<parallel>], iteration_bounds = array<i64: 1>, scalar_prefetch = 0 : i64, scratch_operands = 0 : i64, tpu.core_type = #tpu.core_type<tc>, window_params = [{transform_indices = @transform_0, window_bounds = array<i64: 16, 32>}, {transform_indices = @transform_1, window_bounds = array<i64: 16, 32>}, {pipeline_mode = #tpu.pipeline_mode<synchronous>, transform_indices = @transform_2, window_bounds = array<i64: 128, 32>}, {pipeline_mode = #tpu.pipeline_mode<synchronous>, transform_indices = @transform_3, window_bounds = array<i64: 128, 32>}, {transform_indices = @transform_4, window_bounds = array<i64: 16, 128>}, {transform_indices = @transform_5, window_bounds = array<i64: 16, 128>}]} {
    %c0 = arith.constant 0 : index
    %c0_0 = arith.constant 0 : index
    %0 = vector.load %arg1[%c0, %c0_0] : memref<16x32xf32, #tpu.memory_space<vmem>>, vector<16x32xf32>
    %c0_1 = arith.constant 0 : index
    %c0_2 = arith.constant 0 : index
    %1 = vector.load %arg3[%c0_1, %c0_2] : memref<128x32xf32, #tpu.memory_space<vmem>>, vector<128x32xf32>
    %cst = arith.constant dense<0.000000e+00> : vector<16x128xf32>
    %2 = tpu.matmul %0, %1, %cst {dimension_numbers = #tpu.dot_dimension_numbers<[1], [1], [0], [0], [0, 0, 1, 0], [], []>} : vector<16x32xf32>, vector<128x32xf32>, vector<16x128xf32> -> vector<16x128xf32>
    %3 = arith.negf %2 : vector<16x128xf32>
    %4 = math.exp %3 : vector<16x128xf32>
    %cst_3 = arith.constant 1.000000e+00 : f32
    %5 = vector.broadcast %cst_3 : f32 to vector<16x128xf32>
    %6 = arith.addf %5, %4 : vector<16x128xf32>
    %7 = arith.divf %5, %6 : vector<16x128xf32>
    %cst_4 = arith.constant 1.000000e+00 : f32
    %8 = vector.broadcast %cst_4 : f32 to vector<16x128xf32>
    %9 = arith.subf %8, %7 : vector<16x128xf32>
    %10 = arith.mulf %7, %7 : vector<16x128xf32>
    %11 = arith.mulf %9, %9 : vector<16x128xf32>
    %cst_5 = arith.constant 7.500000e-01 : f32
    %12 = vector.broadcast %cst_5 : f32 to vector<16x128xf32>
    %13 = arith.mulf %12, %10 : vector<16x128xf32>
    %cst_6 = arith.constant 9.99999993E-9 : f32
    %14 = vector.broadcast %cst_6 : f32 to vector<16x128xf32>
    %15 = arith.addf %9, %14 : vector<16x128xf32>
    %16 = math.log %15 : vector<16x128xf32>
    %cst_7 = arith.constant 0.000000e+00 : f32
    %17 = vector.broadcast %cst_7 : f32 to vector<16x128xf32>
    %18 = arith.subf %17, %16 : vector<16x128xf32>
    %19 = arith.mulf %13, %18 : vector<16x128xf32>
    %cst_8 = arith.constant 2.500000e-01 : f32
    %20 = vector.broadcast %cst_8 : f32 to vector<16x128xf32>
    %21 = arith.mulf %20, %11 : vector<16x128xf32>
    %cst_9 = arith.constant 9.99999993E-9 : f32
    %22 = vector.broadcast %cst_9 : f32 to vector<16x128xf32>
    %23 = arith.addf %7, %22 : vector<16x128xf32>
    %24 = math.log %23 : vector<16x128xf32>
    %cst_10 = arith.constant 0.000000e+00 : f32
    %25 = vector.broadcast %cst_10 : f32 to vector<16x128xf32>
    %26 = arith.subf %25, %24 : vector<16x128xf32>
    %27 = arith.mulf %21, %26 : vector<16x128xf32>
    %28 = arith.subf %27, %19 : vector<16x128xf32>
    %c0_11 = arith.constant 0 : index
    %c0_12 = arith.constant 0 : index
    %29 = vector.load %arg5[%c0_11, %c0_12] : memref<16x128xf32, #tpu.memory_space<vmem>>, vector<16x128xf32>
    tpu.vector_store %arg5[%c0_11, %c0_12], %28 {strides = array<i32>} : memref<16x128xf32, #tpu.memory_space<vmem>>, vector<16x128xf32>,
    %c0_13 = arith.constant 0 : index
    %c0_14 = arith.constant 0 : index
    %30 = vector.load %arg2[%c0_13, %c0_14] : memref<16x32xf32, #tpu.memory_space<vmem>>, vector<16x32xf32>
    %31 = arith.mulf %30, %30 : vector<16x32xf32>
    %cst_15 = arith.constant dense<0.000000e+00> : vector<16xf32>
    %32 = vector.multi_reduction <add>, %31, %cst_15 [1] : vector<16x32xf32> to vector<16xf32>
    %33 = vector.shape_cast %32 : vector<16xf32> to vector<16x1xf32>
    %cst_16 = arith.constant 1.000000e-24 : f32
    %34 = vector.broadcast %cst_16 : f32 to vector<16x1xf32>
    %35 = arith.maximumf %33, %34 : vector<16x1xf32>
    %36 = math.rsqrt %35 : vector<16x1xf32>
    %37 = vector.broadcast %36 : vector<16x1xf32> to vector<16x32xf32>
    %38 = arith.mulf %30, %37 : vector<16x32xf32>
    %c0_17 = arith.constant 0 : index
    %c0_18 = arith.constant 0 : index
    %39 = vector.load %arg4[%c0_17, %c0_18] : memref<128x32xf32, #tpu.memory_space<vmem>>, vector<128x32xf32>
    %cst_19 = arith.constant dense<0.000000e+00> : vector<16x128xf32>
    %40 = tpu.matmul %38, %39, %cst_19 {dimension_numbers = #tpu.dot_dimension_numbers<[1], [1], [0], [0], [0, 0, 1, 0], [], []>} : vector<16x32xf32>, vector<128x32xf32>, vector<16x128xf32> -> vector<16x128xf32>
    %cst_20 = arith.constant 1.000000e+00 : f32
    %41 = vector.broadcast %cst_20 : f32 to vector<16x128xf32>
    %42 = arith.subf %41, %40 : vector<16x128xf32>
    %c0_21 = arith.constant 0 : index
    %c0_22 = arith.constant 0 : index
    %43 = vector.load %arg6[%c0_21, %c0_22] : memref<16x128xf32, #tpu.memory_space<vmem>>, vector<16x128xf32>
    tpu.vector_store %arg6[%c0_21, %c0_22], %42 {strides = array<i32>} : memref<16x128xf32, #tpu.memory_space<vmem>>, vector<16x128xf32>,
    return
  }
  func.func @transform_0(%arg0: i32) -> (i32, i32) {
    %c0_i32 = arith.constant 0 : i32
    %c0_i32_0 = arith.constant 0 : i32
    return %arg0, %c0_i32 : i32, i32
  }
  func.func @transform_1(%arg0: i32) -> (i32, i32) {
    %c0_i32 = arith.constant 0 : i32
    %c0_i32_0 = arith.constant 0 : i32
    return %arg0, %c0_i32 : i32, i32
  }
  func.func @transform_2(%arg0: i32) -> (i32, i32) {
    %c0_i32 = arith.constant 0 : i32
    %c0_i32_0 = arith.constant 0 : i32
    %c0_i32_1 = arith.constant 0 : i32
    return %c0_i32, %c0_i32_0 : i32, i32
  }
  func.func @transform_3(%arg0: i32) -> (i32, i32) {
    %c0_i32 = arith.constant 0 : i32
    %c0_i32_0 = arith.constant 0 : i32
    %c0_i32_1 = arith.constant 0 : i32
    return %c0_i32, %c0_i32_0 : i32, i32
  }
  func.func @transform_4(%arg0: i32) -> (i32, i32) {
    %c0_i32 = arith.constant 0 : i32
    %c0_i32_0 = arith.constant 0 : i32
    return %arg0, %c0_i32 : i32, i32
  }
  func.func @transform_5(%arg0: i32) -> (i32, i32) {
    %c0_i32 = arith.constant 0 : i32
    %c0_i32_0 = arith.constant 0 : i32
    return %arg0, %c0_i32 : i32, i32
  }
}

</mosaic_0001>

<bundles_post_ra>
// kernel: tpu_custom_call.1
= control target key start
LH: loop header
LB: loop body
LE: loop exit
PB: predicated region body
PF: predicated region fallthrough
CT: control target
= control target key end

     0   :  { %11 = vsyncpa [#allocation3], 0  ;;  %vm39_vm0 = vcmask 261120   ;;  %s976_s0 = inlined_call_operand.vmem [shape: f32[16,32], index: 0, kind: input, shape index: {}]   ;;  %s977_s1 = inlined_call_operand.vmem [shape: f32[16,32], index: 1, kind: input, shape index: {}]   ;;  %s978_s2 = inlined_call_operand.vmem [shape: f32[128,32], index: 2, kind: input, shape index: {}]   ;;  %s979_s3 = inlined_call_operand.vmem [shape: f32[128,32], index: 3, kind: input, shape index: {}]   ;;  %s980_s4 = inlined_call_operand.hbm [shape: f32[16,128], index: 4, kind: output, shape index: {0}]   ;;  %s981_s5 = inlined_call_operand.hbm [shape: f32[16,128], index: 5, kind: output, shape index: {1}]  }
   0x1   :  { %v761_v0 = vld [vmem:[%s977_s1] sm:$0xff]  ;;  %v766_v1 = vld [vmem:[%s977_s1 + $0x8] sm:$0xff]  ;;  %vm775_vm1 = vmpackc.low %vm39_vm0, %vm39_vm0 }
   0x2   :  { %v23_v2 = vld [vmem:[%s978_s2] sm:$0xff]  ;;  %v217_v3 = vmul.f32 %v761_v0, %v761_v0  ;;  %v218_v5 = vmul.f32 %v766_v1, %v766_v1  ;;  %v24_v6 = vld [vmem:[%s978_s2 + $0x8] sm:$0xff]  ;;  %v25_v7 = vld [vmem:[%s978_s2 + $0x10] sm:$0xff] }
   0x3   :  { %v556_v8 = vpack.c.bf16 %v24_v6, %v23_v2  ;;  %v26_v9 = vld [vmem:[%s978_s2 + $0x18] sm:$0xff]  ;;  %v27_v13 = vld [vmem:[%s978_s2 + $0x20] sm:$0xff]  ;;  %v28_v16 = vld [vmem:[%s978_s2 + $0x28] sm:$0xff] }
   0x4   :  { %v219_v10 = vsel %vm39_vm0, %v217_v3, 0.0  ;;  %v562_v11 = vpack.c.bf16 %v26_v9, %v25_v7  ;;  %v222_v12 = vsel %vm39_vm0, %v218_v5, 0.0  ;;  %v21_v14 = vld [vmem:[%s976_s0] sm:$0xff]  ;;  %v232_v17 = vld [vmem:[%s979_s3 + $0x8] sm:$0xff]  ;;  %v233_v18 = vld [vmem:[%s979_s3 + $0x10] sm:$0xff]  ;;  %v568_v22 = vpack.c.bf16 %v28_v16, %v27_v13 }
   0x5   :  { %220 = vadd.xlane.f32.xlu0 %v219_v10  ;;  %558 = vmatprep.subr.msk.bf16.mxu0 %vm775_vm1, %v556_v8  ;;  %v231_v15 = vld [vmem:[%s979_s3] sm:$0xff]  ;;  %v234_v20 = vld [vmem:[%s979_s3 + $0x18] sm:$0xff] }
   0x6   :  { %561 = vmatpush3.bf16.xpose.msk.msra.mxu0 %vm775_vm1, %v556_v8  ;;  %518 = vmatprep.mubr.msk.f32.mxu0 %vm39_vm0, %v21_v14  ;;  %v604_v19 = vpack.c.bf16 %v232_v17, %v231_v15  ;;  %v610_v21 = vpack.c.bf16 %v234_v20, %v233_v18 }
   0x7   :  { %564 = vmatprep.subr.msk.bf16.mxu0 %vm775_vm1, %v562_v11 }
   0x8   :  { %606 = vmatprep.subr.msk.bf16.mxu1 %vm775_vm1, %v604_v19 }
   0x9   :  { %223 = vadd.xlane.f32.xlu0 %v222_v12  ;;  %609 = vmatpush3.bf16.xpose.msk.msra.mxu1 %vm775_vm1, %v604_v19 }
   0xa   :  { %12 = vsyncpa [#allocation5], 0  ;;  %612 = vmatprep.subr.msk.bf16.mxu1 %vm775_vm1, %v610_v21  ;;  %v235_v23 = vld [vmem:[%s979_s3 + $0x20] sm:$0xff]  ;;  %v236_v24 = vld [vmem:[%s979_s3 + $0x28] sm:$0xff] }
   0xb   :  { %v29_v25 = vld [vmem:[%s978_s2 + $0x30] sm:$0xff]  ;;  %v30_v26 = vld [vmem:[%s978_s2 + $0x38] sm:$0xff]  ;;  %v616_v27 = vpack.c.bf16 %v236_v24, %v235_v23  ;;  %v31_v31 = vld [vmem:[%s978_s2 + $0x40] sm:$0xff] }
   0xc   :  { %v574_v28 = vpack.c.bf16 %v30_v26, %v29_v25  ;;  %v237_v29 = vld [vmem:[%s979_s3 + $0x30] sm:$0xff]  ;;  %v238_v30 = vld [vmem:[%s979_s3 + $0x38] sm:$0xff]  ;;  %v32_v32 = vld [vmem:[%s978_s2 + $0x48] sm:$0xff] }
   0xd   :  { %v622_v33 = vpack.c.bf16 %v238_v30, %v237_v29  ;;  %v580_v34 = vpack.c.bf16 %v32_v32, %v31_v31  ;;  %v239_v35 = vld [vmem:[%s979_s3 + $0x40] sm:$0xff]  ;;  %v240_v36 = vld [vmem:[%s979_s3 + $0x48] sm:$0xff]  ;;  %v33_v37 = vld [vmem:[%s978_s2 + $0x50] sm:$0xff] }
   0xe   :  { %567 = vmatpush3.bf16.xpose.msk.msra.mxu0 %vm775_vm1, %v562_v11  ;;  %v34_v38 = vld [vmem:[%s978_s2 + $0x58] sm:$0xff]  ;;  %v628_v39 = vpack.c.bf16 %v240_v36, %v239_v35  ;;  %v241_v41 = vld [vmem:[%s979_s3 + $0x50] sm:$0xff]  ;;  %v35_v43 = vld [vmem:[%s978_s2 + $0x60] sm:$0xff] }
   0xf   :  { %570 = vmatprep.subr.msk.bf16.mxu0 %vm775_vm1, %v568_v22  ;;  %v586_v40 = vpack.c.bf16 %v34_v38, %v33_v37  ;;  %v242_v42 = vld [vmem:[%s979_s3 + $0x58] sm:$0xff]  ;;  %v36_v44 = vld [vmem:[%s978_s2 + $0x68] sm:$0xff]  ;;  %v243_v47 = vld [vmem:[%s979_s3 + $0x60] sm:$0xff] }
  0x10   :  { %v634_v45 = vpack.c.bf16 %v242_v42, %v241_v41  ;;  %v592_v46 = vpack.c.bf16 %v36_v44, %v35_v43  ;;  %v244_v48 = vld [vmem:[%s979_s3 + $0x68] sm:$0xff]  ;;  %v37_v49 = vld [vmem:[%s978_s2 + $0x70] sm:$0xff]  ;;  %v38_v50 = vld [vmem:[%s978_s2 + $0x78] sm:$0xff] }
  0x11   :  { %615 = vmatpush3.bf16.xpose.msk.msra.mxu1 %vm775_vm1, %v610_v21  ;;  %v640_v51 = vpack.c.bf16 %v244_v48, %v243_v47  ;;  %v598_v52 = vpack.c.bf16 %v38_v50, %v37_v49  ;;  %v245_v53 = vld [vmem:[%s979_s3 + $0x70] sm:$0xff]  ;;  %v246_v54 = vld [vmem:[%s979_s3 + $0x78] sm:$0xff]  ;;  %v22_v56 = vld [vmem:[%s976_s0 + $0x8] sm:$0xff]  ;;  %s724_s0 = smov [#allocation2]  }
  0x12   :  { %618 = vmatprep.subr.msk.bf16.mxu1 %vm775_vm1, %v616_v27  ;;  %v646_v55 = vpack.c.bf16 %v246_v54, %v245_v53  ;;  %s385_s3 = sshll.u32 %s724_s0, 4  ;;  %s386_s3 = int_to_ptr.vmem [resolvable:$true] %s385_s3 }
  0x13   :  { %s676_s11 = scalar_lea.vmem %s386_s3, 256  ;;  %p681_p1 = scmp.lt.s32.totalorder %s386_s3, %s386_s3 }
  0x14   :  { %p677_p0 = scmp.ne.s32.totalorder %s386_s3, %s676_s11  ;;  %p682_p2 = scmp.lt.s32.totalorder %s676_s11, %s676_s11 }
  0x16   :  { %573 = vmatpush3.bf16.xpose.msk.msra.mxu0 %vm775_vm1, %v568_v22  ;;  %p683_p3 = por %p682_p2, %p681_p1 }
  0x17   :  { %576 = vmatprep.subr.msk.bf16.mxu0 %vm775_vm1, %v574_v28 }
  0x18   :  { %p684_p4 = pnand %p683_p3, %p677_p0 }
  0x19   :  { %621 = vmatpush3.bf16.xpose.msk.msra.mxu1 %vm775_vm1, %v616_v27 }
  0x1a   :  { %624 = vmatprep.subr.msk.bf16.mxu1 %vm775_vm1, %v622_v33 }
  0x1e   :  { %579 = vmatpush3.bf16.xpose.msk.msra.mxu0 %vm775_vm1, %v574_v28 }
  0x1f   :  { %582 = vmatprep.subr.msk.bf16.mxu0 %vm775_vm1, %v580_v34 }
  0x21   :  { %627 = vmatpush3.bf16.xpose.msk.msra.mxu1 %vm775_vm1, %v622_v33 }
  0x22   :  { %630 = vmatprep.subr.msk.bf16.mxu1 %vm775_vm1, %v628_v39 }
  0x26   :  { %585 = vmatpush3.bf16.xpose.msk.msra.mxu0 %vm775_vm1, %v580_v34 }
  0x27   :  { %588 = vmatprep.subr.msk.bf16.mxu0 %vm775_vm1, %v586_v40 }
  0x29   :  { %633 = vmatpush3.bf16.xpose.msk.msra.mxu1 %vm775_vm1, %v628_v39 }
  0x2a   :  { %636 = vmatprep.subr.msk.bf16.mxu1 %vm775_vm1, %v634_v45 }
  0x2e   :  { %591 = vmatpush3.bf16.xpose.msk.msra.mxu0 %vm775_vm1, %v586_v40 }
  0x2f   :  { %594 = vmatprep.subr.msk.bf16.mxu0 %vm775_vm1, %v592_v46 }
  0x31   :  { %639 = vmatpush3.bf16.xpose.msk.msra.mxu1 %vm775_vm1, %v634_v45 }
  0x32   :  { %642 = vmatprep.subr.msk.bf16.mxu1 %vm775_vm1, %v640_v51 }
  0x36   :  { %597 = vmatpush3.bf16.xpose.msk.msra.mxu0 %vm775_vm1, %v592_v46 }
  0x37   :  { %600 = vmatprep.subr.msk.bf16.mxu0 %vm775_vm1, %v598_v52 }
  0x39   :  { %645 = vmatpush3.bf16.xpose.msk.msra.mxu1 %vm775_vm1, %v640_v51 }
  0x3a   :  { %648 = vmatprep.subr.msk.bf16.mxu1 %vm775_vm1, %v646_v55 }
  0x3e   :  { %603 = vmatpush3.bf16.xpose.msk.msra.mxu0 %vm775_vm1, %v598_v52 }
  0x41   :  { %651 = vmatpush3.bf16.xpose.msk.msra.mxu1 %vm775_vm1, %v646_v55 }
  0x45   :  { %519 = vmatmul.mubr.msk.f32.vlgmr.msra.gmra.mrb[0].mxu0 %vm39_vm0, %v22_v56 }
  0x92   :  { %v221_v57 = vpop.xlane.xlu0 %220 }
  0x93   :  { %v225_v58 = vmax.f32 %v221_v57, 1e-24 }
  0x95   :  { %656 = vrsqrt.f32 %v225_v58 }
  0x96   :  { %v224_v59 = vpop.xlane.xlu0 %223 }
  0x97   :  { %v226_v60 = vmax.f32 %v224_v59, 1e-24 }
  0x99   :  { %658 = vrsqrt.f32 %v226_v60 }
  0x9f   :  { %v657_v61 = vpop.eup %656 }
  0xa0   :  { %v229_v62 = vmul.f32 %v657_v61, %v761_v0 }
  0xa2   :  { %553 = vmatprep.mubr.msk.f32.mxu1 %vm39_vm0, %v229_v62 }
  0xa3   :  { %v659_v63 = vpop.eup %658 }
  0xa4   :  { %v230_v2 = vmul.f32 %v659_v63, %v766_v1 }
  0xa6   :  { %554 = vmatmul.mubr.msk.f32.vlgmr.msra.gmra.mrb[0].mxu1 %vm39_vm0, %v230_v2 }
 0x118   :  { %v520_v3 = vpop.f32.mrb[0].mxu0 }
 0x119   :  { %v431_v4 = vmul.f32 -1.442695, %v520_v3  ;;  %v160_v5 = vpop.f32.mrb[1].mxu0 }
 0x11a   :  { %v430_v6 = vmul.f32 -1.442695, %v160_v5 }
 0x11b   :  { %660 = vpow2.f32 %v431_v4 }
 0x11c   :  { %662 = vpow2.f32 %v430_v6 }
 0x125   :  { %v661_v7 = vpop.eup %660 }
 0x126   :  { %v663_v8 = vpop.eup %662  ;;  %v176_v9 = vadd.f32 1.0, %v661_v7 }
 0x127   :  { %v175_v10 = vadd.f32 1.0, %v663_v8 }
 0x128   :  { %664 = vrcp.f32 %v176_v9 }
 0x129   :  { %666 = vrcp.f32 %v175_v10 }
 0x132   :  { %v665_v0 = vpop.eup %664 }
 0x133   :  { %v667_v11 = vpop.eup %666  ;;  %v182_v12 = vsub.f32 1.0, %v665_v0  ;;  %v202_v13 = vadd.f32 1e-08, %v665_v0  ;;  %v184_v19 = vmul.f32 %v665_v0, %v665_v0 }
 0x134   :  { %v181_v14 = vsub.f32 1.0, %v667_v11  ;;  %v201_v1 = vadd.f32 1e-08, %v667_v11  ;;  %v183_v21 = vmul.f32 %v667_v11, %v667_v11 }
 0x135   :  { %v190_v15 = vadd.f32 1e-08, %v182_v12  ;;  %668 = vlog2.f32 %v202_v13  ;;  %v186_v17 = vmul.f32 %v182_v12, %v182_v12  ;;  %v188_v29 = vmul.f32 0.75, %v184_v19 }
 0x136   :  { %v189_v16 = vadd.f32 1e-08, %v181_v14  ;;  %670 = vlog2.f32 %v201_v1  ;;  %v185_v18 = vmul.f32 %v181_v14, %v181_v14  ;;  %v187_v32 = vmul.f32 0.75, %v183_v21 }
 0x137   :  { %672 = vlog2.f32 %v190_v15  ;;  %v200_v23 = vmul.f32 0.25, %v186_v17 }
 0x138   :  { %674 = vlog2.f32 %v189_v16  ;;  %v199_v26 = vmul.f32 0.25, %v185_v18 }
 0x13f   :  { %v669_v20 = vpop.eup %668 }
 0x140   :  { %v671_v22 = vpop.eup %670  ;;  %v206_v24 = vmul.f32 0.6931472, %v669_v20 }
 0x141   :  { %v673_v25 = vpop.eup %672  ;;  %v204_v27 = vmul.f32 0.6931472, %v671_v22 }
 0x142   :  { %v675_v28 = vpop.eup %674  ;;  %v194_v30 = vmul.f32 0.6931472, %v673_v25  ;;  %v208_v31 = vsub.f32 0.0, %v206_v24 }
 0x143   :  { %v192_v33 = vmul.f32 0.6931472, %v675_v28  ;;  %v207_v34 = vsub.f32 0.0, %v204_v27 }
 0x144   :  { %v196_v35 = vsub.f32 0.0, %v194_v30  ;;  %v210_v36 = vmul.f32 %v208_v31, %v200_v23 }
 0x145   :  { %v195_v37 = vsub.f32 0.0, %v192_v33  ;;  %v209_v38 = vmul.f32 %v207_v34, %v199_v26 }
 0x146   :  { %v198_v39 = vmul.f32 %v196_v35, %v188_v29 }
 0x147   :  { %v197_v40 = vmul.f32 %v195_v37, %v187_v32 }
 0x148   :  { %v212_v41 = vsub.f32 %v210_v36, %v198_v39 }
 0x149   :  { %v211_v42 = vsub.f32 %v209_v38, %v197_v40 }
 0x14a   :  { %214 = vst [vmem:[#allocation2 + $0x8] sm:$0xff] %v212_v41 }
 0x14b   :  { %213 = vst [vmem:[#allocation2] sm:$0xff] %v211_v42 }
 0x14c   :  { %687 = shalt.err (!%p684_p4)
}
 0x14d   :  { %s688_s14 = scalar_lea.hbm %s980_s4, 256 }
 0x14e   :  { %p689_p5 = scmp.ne.s32.totalorder %s980_s4, %s688_s14  ;;  %p692_p6 = scmp.lt.u32.totalorder %s688_s14, %s980_s4 }
 0x150   :  { %p694_p7 = pnand %p692_p6, %p689_p5 }
 0x152   :  { %697 = shalt.err (!%p694_p7)
}
 0x153   :  { %s725_s19 = smov 128   ;;  %s726_s20 = smov 8  }
 0x154   :  { %391 = dma.vmem_to_hbm [thread:$0]  %s386_s3, 256, %s980_s4, [#allocation3], %s725_s19, %s725_s19, %s726_s20  }
 0x155   :  { %s727_s23 = smov [#allocation4]  }
 0x156   :  { %s397_s24 = sshll.u32 %s727_s23, 4  ;;  %s398_s24 = int_to_ptr.vmem [resolvable:$true] %s397_s24 }
 0x157   :  { %s698_s25 = scalar_lea.vmem %s398_s24, 256  ;;  %p703_p9 = scmp.lt.s32.totalorder %s398_s24, %s398_s24 }
 0x158   :  { %p699_p8 = scmp.ne.s32.totalorder %s398_s24, %s698_s25  ;;  %p704_p10 = scmp.lt.s32.totalorder %s698_s25, %s698_s25 }
 0x15a   :  { %p705_p11 = por %p704_p10, %p703_p9 }
 0x15c   :  { %p706_p12 = pnand %p705_p11, %p699_p8 }
 0x179   :  { %v555_v43 = vpop.f32.mrb[0].mxu1 }
 0x17a   :  { %v377_v44 = vsub.f32 1.0, %v555_v43  ;;  %v367_v45 = vpop.f32.mrb[1].mxu1 }
 0x17b   :  { %v376_v46 = vsub.f32 1.0, %v367_v45 }
 0x17c   :  { %379 = vst [vmem:[#allocation4 + $0x8] sm:$0xff] %v377_v44 }
 0x17d   :  { %378 = vst [vmem:[#allocation4] sm:$0xff] %v376_v46 }
 0x17e   :  { %709 = shalt.err (!%p706_p12)
}
 0x17f   :  { %s710_s4 = scalar_lea.hbm %s981_s5, 256 }
 0x180   :  { %p711_p13 = scmp.ne.s32.totalorder %s981_s5, %s710_s4  ;;  %p714_p0 = scmp.lt.u32.totalorder %s710_s4, %s981_s5 }
 0x182   :  { %p716_p1 = pnand %p714_p0, %p711_p13 }
 0x184   :  { %719 = shalt.err (!%p716_p1)
}
 0x185   :  { %403 = dma.vmem_to_hbm [thread:$0]  %s398_s24, 256, %s981_s5, [#allocation5], %s725_s19, %s725_s19, %s726_s20  }
 0x186   :  { %720 = dma.done.wait [#allocation3], 256  }
 0x187   :  { %721 = vsyncadd [#allocation3], 4294967040 }
 0x188   :  { %722 = dma.done.wait [#allocation5], 256  }
 0x189   :  { %723 = vsyncadd [#allocation5], 4294967040 }
 0x18a   :  { %410 = vsyncpa [#allocation3], 1 }
 0x18b   :  { %411 = vsyncpa [#allocation5], 1 }

</bundles_post_ra>
